<compile_context>
chip_gen: v5e
topology: v5e:2x2
jax: 0.10.0
libtpu: 0.0.40
codegen_flags: <defaults>
</compile_context>

<pallas_src>
import jax
import jax.numpy as jnp
from jax.experimental import pallas as pl
from jax.experimental.pallas import tpu as pltpu


# --------------------------------------------------------------------------
# Fused kernel (whole array resident in VMEM): mean + subtract in one shot.
# --------------------------------------------------------------------------
def _fused_kernel(x_ref, o_ref):
    xf = x_ref[...].astype(jnp.float32)
    m = jnp.mean(xf)                      # global reduce on the XLU
    o_ref[...] = (xf - m).astype(o_ref.dtype)


# --------------------------------------------------------------------------
# Pass 1 (large inputs): global sum, accumulated in the resident (1,1) block.
# --------------------------------------------------------------------------
def _sum_kernel(x_ref, sum_ref):
    @pl.when(pl.program_id(0) == 0)
    def _():
        sum_ref[...] = jnp.zeros_like(sum_ref)

    sum_ref[...] += jnp.sum(x_ref[...].astype(jnp.float32), keepdims=True)


# --------------------------------------------------------------------------
# Pass 2 (large inputs): x - mean; mean read from an SMEM scalar.
# --------------------------------------------------------------------------
def _center_kernel(mean_ref, x_ref, o_ref):
    m = mean_ref[0, 0]                    # SMEM scalar, broadcast on the VPU
    o_ref[...] = (x_ref[...].astype(jnp.float32) - m).astype(o_ref.dtype)


def _pick_row_tile(rows, cols, itemsize, max_block_bytes):
    """Largest row tile that (a) keeps a block under max_block_bytes,
    (b) divides `rows`, (c) is a multiple of 8 — or the whole array."""
    max_rows = max(1, max_block_bytes // max(1, cols * itemsize))
    if rows <= max_rows:
        return rows
    start = max_rows - (max_rows % 8)
    for tr in range(start, 0, -8):
        if rows % tr == 0:
            return tr
    return rows  # no clean divisor: single whole-array block


def centered_layer(x):
    """y = x - x.mean(), same shape/dtype as x."""
    orig_shape = x.shape
    n = int(x.size)
    itemsize = jnp.dtype(x.dtype).itemsize

    # Lane-dense 2D view: prefer a 128-wide last axis.
    if n % 128 == 0:
        x2 = x.reshape(n // 128, 128)
    elif x.ndim >= 2:
        x2 = x.reshape(-1, x.shape[-1])
    else:
        x2 = x.reshape(1, n)
    R, C = x2.shape

    # ---- small input: single fused VMEM-resident kernel -------------------
    if n * itemsize <= (4 << 20):
        out = pl.pallas_call(
            _fused_kernel,
            out_shape=jax.ShapeDtypeStruct((R, C), x.dtype),
        )(x2)
        return out.reshape(orig_shape)

    # ---- large input, pass 1: global f32 sum -------------------------------
    tr_sum = _pick_row_tile(R, C, itemsize, 2 << 20)   # ~2 MiB input tiles
    total = pl.pallas_call(
        _sum_kernel,
        out_shape=jax.ShapeDtypeStruct((1, 1), jnp.float32),
        grid=(R // tr_sum,),
        in_specs=[pl.BlockSpec((tr_sum, C), lambda i: (i, 0))],
        out_specs=pl.BlockSpec((1, 1), lambda i: (0, 0)),
        compiler_params=pltpu.CompilerParams(
            dimension_semantics=("arbitrary",)),
    )(x2)

    mean = total / jnp.float32(n)  # (1, 1) f32 scalar

    # ---- large input, pass 2: elementwise centering ------------------------
    tr = _pick_row_tile(R, C, itemsize, 1 << 20)       # ~1 MiB in/out tiles
    centered = pl.pallas_call(
        _center_kernel,
        out_shape=jax.ShapeDtypeStruct((R, C), x.dtype),
        grid=(R // tr,),
        in_specs=[
            pl.BlockSpec(memory_space=pltpu.MemorySpace.SMEM),  # mean scalar
            pl.BlockSpec((tr, C), lambda i: (i, 0)),            # x tile
        ],
        out_specs=pl.BlockSpec((tr, C), lambda i: (i, 0)),
        compiler_params=pltpu.CompilerParams(
            dimension_semantics=("parallel",)),
    )(mean, x2)

    return centered.reshape(orig_shape)


if __name__ == "__main__":
    key = jax.random.PRNGKey(0)

    # Small 4-D input (2048 elements -> lane-dense (16, 128) fused path).
    x = jax.random.normal(key, (2, 4, 16, 16), dtype=jnp.float32)
    out = jax.block_until_ready(centered_layer(x))
    ref = x - jnp.mean(x)
    assert out.shape == x.shape
    assert jnp.allclose(out, ref, atol=1e-5, rtol=1e-5)

    # The exact input from the original module: x = ones(1, 4) -> zeros.
    x_small = jnp.ones((1, 4), dtype=jnp.float32)
    out_small = jax.block_until_ready(centered_layer(x_small))
    assert out_small.shape == x_small.shape
    assert jnp.allclose(out_small, jnp.zeros_like(x_small), atol=1e-6)

    # Medium input (8 MiB f32) to exercise the tiled two-pass path.
    x_big = jax.random.normal(key, (2048, 1024), dtype=jnp.float32)
    out_big = jax.block_until_ready(centered_layer(x_big))
    ref_big = x_big - jnp.mean(x_big)
    assert jnp.allclose(out_big, ref_big, atol=1e-4, rtol=1e-4)

    print("KERNEL_OK")
</pallas_src>

<mosaic_0001>
module attributes {stable_mosaic.version = 11 : i64} {
  func.func @_fused_kernel(%arg0: memref<16x128xf32, #tpu.memory_space<vmem>>, %arg1: memref<16x128xf32, #tpu.memory_space<vmem>>) attributes {dimension_semantics = [], scalar_prefetch = 0 : i64, scratch_operands = 0 : i64, tpu.core_type = #tpu.core_type<tc>} {
    %c0 = arith.constant 0 : index
    %c0_0 = arith.constant 0 : index
    %0 = vector.load %arg0[%c0, %c0_0] : memref<16x128xf32, #tpu.memory_space<vmem>>, vector<16x128xf32>
    %1 = vector.shape_cast %0 : vector<16x128xf32> to vector<1x16x128xf32>
    %cst = arith.constant dense<0.000000e+00> : vector<1xf32>
    %2 = vector.multi_reduction <add>, %1, %cst [1, 2] : vector<1x16x128xf32> to vector<1xf32>
    %3 = vector.shape_cast %2 : vector<1xf32> to vector<1x1x1xf32>
    %4 = vector.extract %3[0, 0, 0] : f32 from vector<1x1x1xf32>
    %cst_1 = arith.constant 2.048000e+03 : f32
    %5 = arith.divf %4, %cst_1 : f32
    %6 = vector.broadcast %5 : f32 to vector<16x128xf32>
    %7 = arith.subf %0, %6 : vector<16x128xf32>
    %c0_2 = arith.constant 0 : index
    %c0_3 = arith.constant 0 : index
    %8 = vector.load %arg1[%c0_2, %c0_3] : memref<16x128xf32, #tpu.memory_space<vmem>>, vector<16x128xf32>
    tpu.vector_store %arg1[%c0_2, %c0_3], %7 {strides = array<i32>} : memref<16x128xf32, #tpu.memory_space<vmem>>, vector<16x128xf32>,
    return
  }
}

</mosaic_0001>

<bundles_post_ra>
// kernel: tpu_custom_call.1
= control target key start
LH: loop header
LB: loop body
LE: loop exit
PB: predicated region body
PF: predicated region fallthrough
CT: control target
= control target key end

     0   :  { %6 = vsyncpa [#allocation3], 0  ;;  %s160_s0 = inlined_call_operand.hbm [shape: f32[16,128], index: 0, kind: input, shape index: {}]   ;;  %s161_s1 = inlined_call_operand.hbm [shape: f32[16,128], index: 1, kind: output, shape index: {}]  }
   0x1   :  { %7 = vsyncpa [#allocation4], 0  ;;  %s12_s8 = sshll.u32 %s160_s0, 4  ;;  %s133_s9 = smov [#allocation2]   ;;  %s13_s8 = int_to_ptr.hbm [resolvable:$true] %s12_s8 }
   0x2   :  { %s14_s10 = sshll.u32 %s133_s9, 4  ;;  %s134_s11 = smov 128   ;;  %s15_s10 = int_to_ptr.vmem [resolvable:$true] %s14_s10 }
   0x3   :  { %s135_s12 = smov 8  }
   0x4   :  { %20 = dma.hbm_to_vmem [thread:$0]  %s13_s8, 256, %s15_s10, [#allocation3], %s134_s11, %s134_s11, %s135_s12  }
   0x5   :  { %129 = dma.done.wait [#allocation3], 256  }
   0x6   :  { %130 = vsyncadd [#allocation3], 4294967040  ;;  %v25_v0 = vld [vmem:[#allocation2] sm:$0xff]  ;;  %v26_v1 = vld [vmem:[#allocation2 + $0x8] sm:$0xff]  ;;  %v136_v3 = vmov 2048.0   ;;  %s137_s15 = smov [#allocation5]  }
   0x7   :  { %v27_v2 = vadd.f32 %v26_v1, %v25_v0  ;;  %79 = vrcp.f32 %v136_v3  ;;  %s55_s16 = sshll.u32 %s137_s15, 4  ;;  %s57_s19 = sshll.u32 %s161_s1, 4  ;;  %s56_s16 = int_to_ptr.vmem [resolvable:$true] %s55_s16  ;;  %s58_s19 = int_to_ptr.hbm [resolvable:$true] %s57_s19 }
   0x9   :  { %28 = vadd.xlane.f32.xlu0 %v27_v2 }
   0xd   :  { %v80_v4 = vpop.eup %79 }
   0xe   :  { %v38_v5 = vmul.f32 2048.0, %v80_v4  ;;  %vm42_vm0 = vweird.f32 %v80_v4 }
  0x10   :  { %v39_v6 = vsub.f32 1.0, %v38_v5 }
  0x12   :  { %v40_v10 = vmul.f32 %v80_v4, %v39_v6 }
  0x14   :  { %v41_v13 = vadd.f32 %v80_v4, %v40_v10 }
  0x16   :  { %v43_v16 = vsel %vm42_vm0, %v80_v4, %v41_v13 }
  0x7c   :  { %v29_v7 = vpop.xlane.xlu0 %28 }
  0x7d   :  { %v30_v8 = vrot.slane %v29_v7, 4 }
  0x7f   :  { %v31_v9 = vadd.f32 %v30_v8, %v29_v7 }
  0x81   :  { %v32_v11 = vrot.slane %v31_v9, 2 }
  0x83   :  { %v33_v12 = vadd.f32 %v32_v11, %v31_v9 }
  0x85   :  { %v34_v14 = vrot.slane %v33_v12, 1 }
  0x87   :  { %v35_v15 = vadd.f32 %v34_v14, %v33_v12 }
  0x89   :  { %70 = vpush %v35_v15 }
  0x8a   :  { %72 = vpush %v43_v16 }
  0xba   :  { %s71_s0 = spop %70 }
  0xbb   :  { %s73_s13 = spop %72 }
  0xbc   :  { %s45_s14 = smul.f32 %s73_s13, %s71_s0 }
  0xbe   :  { %v46_v17 = vstv %s45_s14 }
  0xbf   :  { %v47_v18 = vsub.f32 %v25_v0, %v46_v17  ;;  %v48_v19 = vsub.f32 %v26_v1, %v46_v17 }
  0xc1   :  { %49 = vst [vmem:[#allocation5] sm:$0xff] %v47_v18 }
  0xc2   :  { %50 = vst [vmem:[#allocation5 + $0x8] sm:$0xff] %v48_v19 }
  0xc3   :  { %63 = dma.vmem_to_hbm [thread:$0]  %s56_s16, 256, %s58_s19, [#allocation4], %s134_s11, %s134_s11, %s135_s12  }
  0xc4   :  { %131 = dma.done.wait [#allocation4], 256  }
  0xc5   :  { %132 = vsyncadd [#allocation4], 4294967040 }
  0xc6   :  { %68 = vsyncpa [#allocation3], 1 }
  0xc7   :  { %69 = vsyncpa [#allocation4], 1 }

</bundles_post_ra>
